<compile_context>
chip_gen: v5e
topology: v5e:2x2
jax: 0.10.0
libtpu: 0.0.40
codegen_flags: <defaults>
</compile_context>

<pallas_src>
import functools
import math

import jax
import jax.numpy as jnp
import numpy as np
from jax.experimental import pallas as pl
from jax.experimental.pallas import tpu as pltpu


# ----------------------------------------------------------------------------
# Recurrent Pallas kernel.
# Grid: (batch_chunks [parallel], time_chunks [arbitrary/sequential]).
# Per time chunk: resident bf16 wh, t_blk unrolled recurrence steps on
# register-carried f32 h/c, one (t_blk, b_blk, H) output slab write.
# ----------------------------------------------------------------------------
def _lstm_recurrent_kernel(gx_ref, wh_ref, h0_ref, c0_ref,
                           y_ref, h_out_ref, c_out_ref,
                           h_sc, c_sc, *, seq_len, t_blk, n_pad):
    t_chunk = pl.program_id(1)

    @pl.when(t_chunk == 0)
    def _():
        h_sc[...] = h0_ref[...].astype(jnp.float32)
        c_sc[...] = c0_ref[...].astype(jnp.float32)

    H = h_sc.shape[-1]
    wh = wh_ref[...]                      # resident bf16 (H, 4H)
    base = t_chunk * t_blk

    h = h_sc[...]                         # f32 carries
    c = c_sc[...]
    for j in range(t_blk):                # statically unrolled
        # Only the recurrent matmul is on the serial critical path; the input
        # projection + bias were precomputed into gx (bf16) outside the kernel.
        gate = gx_ref[j].astype(jnp.float32) + jnp.dot(
            h.astype(wh.dtype), wh, preferred_element_type=jnp.float32)  # (B,4H) f32
        # NOTE: keep H a multiple of 128 in real configs so these gate slices
        # land on lane boundaries (register selects instead of XLU work).
        i = jax.nn.sigmoid(gate[:, 0 * H:1 * H])
        f = jax.nn.sigmoid(gate[:, 1 * H:2 * H])
        o = jax.nn.sigmoid(gate[:, 2 * H:3 * H])
        u = jnp.tanh(gate[:, 3 * H:4 * H])
        c_new = f * c + i * u
        h_new = o * jnp.tanh(c_new)
        y_ref[j] = h_new.astype(y_ref.dtype)
        if j >= t_blk - n_pad:
            # Only the final n_pad unrolled steps can ever be padding, and only
            # in the tail time chunk; all other steps pay zero mask cost.
            valid = (base + j) < seq_len
            h_new = jnp.where(valid, h_new, h)
            c_new = jnp.where(valid, c_new, c)
        h, c = h_new, c_new

    h_sc[...] = h
    c_sc[...] = c

    @pl.when(t_chunk == pl.num_programs(1) - 1)
    def _():
        h_out_ref[...] = h.astype(h_out_ref.dtype)
        c_out_ref[...] = c.astype(c_out_ref.dtype)


def lstm_layer_forward(x, wx, wh, bias_l, h0, c0, t_blk=16):
    """One LSTM layer over the full sequence (hoisted bf16 input proj + Pallas recurrence)."""
    S, B, I = x.shape
    H = h0.shape[-1]
    G = 4 * H
    out_dtype = x.dtype

    # --- time chunking; pad x (not the 4x larger gx) on the ragged path ------
    t_blk = max(1, min(t_blk, S))
    num_t = pl.cdiv(S, t_blk)
    s_pad = num_t * t_blk
    n_pad = s_pad - S

    # --- pad batch to a multiple of 8 sublanes; split across cores if >=16 ---
    b_pad = max(8, ((B + 7) // 8) * 8)
    num_b = 2 if (b_pad >= 16 and b_pad % 16 == 0) else 1   # claims v7x 2nd TC
    b_blk = b_pad // num_b

    if s_pad != S or b_pad != B:
        x = jnp.pad(x, ((0, s_pad - S), (0, b_pad - B), (0, 0)))
    if b_pad != B:
        h0 = jnp.pad(h0, ((0, b_pad - B), (0, 0)))
        c0 = jnp.pad(c0, ((0, b_pad - B), (0, 0)))

    # --- (1) hoisted input projection: bf16 inputs, f32 accumulate, bf16 gx --
    # TODO(synk): for HBM-bound v5e configs, fuse this projection per chunk
    # inside the kernel (resident wx) to avoid the gx HBM round trip.
    gx = jnp.dot(x.reshape(s_pad * b_pad, I).astype(jnp.bfloat16),
                 wx.astype(jnp.bfloat16),
                 preferred_element_type=jnp.float32)
    gx = (gx + bias_l[None, :].astype(jnp.float32)).astype(jnp.bfloat16)
    gx = gx.reshape(s_pad, b_pad, G)
    wh_bf = wh.astype(jnp.bfloat16)

    # --- (2) recurrent Pallas kernel ----------------------------------------
    kernel = functools.partial(
        _lstm_recurrent_kernel, seq_len=S, t_blk=t_blk, n_pad=n_pad)

    grid_spec = pltpu.PrefetchScalarGridSpec(
        num_scalar_prefetch=0,
        grid=(num_b, num_t),
        in_specs=[
            pl.BlockSpec((t_blk, b_blk, G), lambda b, t: (t, b, 0)),   # gx chunk (bf16)
            pl.BlockSpec((H, G), lambda b, t: (0, 0),
                         pipeline_mode=pl.Buffered(1)),                # wh resident (bf16)
            pl.BlockSpec((b_blk, H), lambda b, t: (b, 0),
                         pipeline_mode=pl.Buffered(1)),                # h0
            pl.BlockSpec((b_blk, H), lambda b, t: (b, 0),
                         pipeline_mode=pl.Buffered(1)),                # c0
        ],
        out_specs=[
            pl.BlockSpec((t_blk, b_blk, H), lambda b, t: (t, b, 0)),   # y chunk
            pl.BlockSpec((b_blk, H), lambda b, t: (b, 0)),             # final h
            pl.BlockSpec((b_blk, H), lambda b, t: (b, 0)),             # final c
        ],
        scratch_shapes=[
            pltpu.VMEM((b_blk, H), jnp.float32),                       # h carry
            pltpu.VMEM((b_blk, H), jnp.float32),                       # c carry
        ],
    )

    dt_out = jnp.dtype(out_dtype).itemsize
    needed = (H * G * 2                                # wh bf16, single buffer
              + 2 * t_blk * b_blk * G * 2              # gx chunks, double buffered (bf16)
              + 2 * t_blk * b_blk * H * dt_out         # y chunks, double buffered
              + 4 * b_blk * H * dt_out                 # h0/c0 + final h/c
              + 2 * b_blk * H * 4)                     # f32 h/c scratch
    vmem_limit = int(min(max(2 * needed + (4 << 20), 32 << 20), 64 << 20))

    y, h_out, c_out = pl.pallas_call(
        kernel,
        grid_spec=grid_spec,
        out_shape=(
            jax.ShapeDtypeStruct((s_pad, b_pad, H), out_dtype),
            jax.ShapeDtypeStruct((b_pad, H), out_dtype),
            jax.ShapeDtypeStruct((b_pad, H), out_dtype),
        ),
        compiler_params=pltpu.CompilerParams(
            dimension_semantics=("parallel", "arbitrary"),  # time is sequential
            vmem_limit_bytes=vmem_limit),
    )(gx, wh_bf, h0, c0)

    return y[:S, :B], h_out[:B], c_out[:B]


# ----------------------------------------------------------------------------
# LSTM module (JAX / Pallas). Mirrors ding.torch_utils.network.rnn.LSTM with
# norm_type=None (identity), dropout=0.0.
# ----------------------------------------------------------------------------
class PallasLSTM:

    def __init__(self, input_size, hidden_size, num_layers, key, t_blk=16):
        self.input_size = input_size
        self.hidden_size = hidden_size
        self.num_layers = num_layers
        self.t_blk = t_blk
        gain = math.sqrt(1.0 / hidden_size)
        dims = [input_size] + [hidden_size] * num_layers
        self.wx, self.wh = [], []
        keys = jax.random.split(key, 3 * num_layers)
        for l in range(num_layers):
            self.wx.append(jax.random.uniform(
                keys[3 * l + 0], (dims[l], dims[l + 1] * 4),
                minval=-gain, maxval=gain, dtype=jnp.float32))
            self.wh.append(jax.random.uniform(
                keys[3 * l + 1], (hidden_size, hidden_size * 4),
                minval=-gain, maxval=gain, dtype=jnp.float32))
        self.bias = jnp.stack([
            jax.random.uniform(keys[3 * l + 2], (hidden_size * 4,),
                               minval=-gain, maxval=gain, dtype=jnp.float32)
            for l in range(num_layers)
        ], axis=0)
        # TODO(synk): norm_type LN/BN variants not implemented (default None = identity).

    def _before_forward(self, inputs, prev_state):
        seq_len, batch_size = inputs.shape[:2]
        if prev_state is None:
            zeros = jnp.zeros((self.num_layers, batch_size, self.hidden_size),
                              dtype=inputs.dtype)
            prev_state = (zeros, zeros)
        return prev_state

    def _after_forward(self, next_state, list_next_state=True):
        if list_next_state:
            h, c = next_state
            batch_size = h.shape[1]
            return [{'h': h[:, b:b + 1, :], 'c': c[:, b:b + 1, :]}
                    for b in range(batch_size)]
        else:
            return {'h': next_state[0], 'c': next_state[1]}

    def forward(self, inputs, prev_state=None, list_next_state=True):
        prev_state = self._before_forward(inputs, prev_state)
        H, C = prev_state
        x = inputs
        hs, cs = [], []
        for l in range(self.num_layers):
            x, h_l, c_l = lstm_layer_forward(
                x, self.wx[l], self.wh[l], self.bias[l], H[l], C[l],
                t_blk=self.t_blk)
            hs.append(h_l)
            cs.append(c_l)
        next_state = (jnp.stack(hs, axis=0), jnp.stack(cs, axis=0))
        return x, self._after_forward(next_state, list_next_state)


# ----------------------------------------------------------------------------
# Pure-JAX reference (for correctness checks of the kernel).
# ----------------------------------------------------------------------------
def lstm_reference(model, inputs):
    seq_len, B = inputs.shape[:2]
    Hn = model.hidden_size
    h = jnp.zeros((model.num_layers, B, Hn), inputs.dtype)
    c = jnp.zeros((model.num_layers, B, Hn), inputs.dtype)
    x = inputs
    hs, cs = [], []
    for l in range(model.num_layers):
        hl, cl = h[l], c[l]
        new_x = []
        for s in range(seq_len):
            gate = x[s] @ model.wx[l] + hl @ model.wh[l] + model.bias[l]
            i, f, o, u = jnp.split(gate, 4, axis=-1)
            i, f, o = jax.nn.sigmoid(i), jax.nn.sigmoid(f), jax.nn.sigmoid(o)
            u = jnp.tanh(u)
            cl = f * cl + i * u
            hl = o * jnp.tanh(cl)
            new_x.append(hl)
        hs.append(hl)
        cs.append(cl)
        x = jnp.stack(new_x, axis=0)
    return x, jnp.stack(hs, axis=0), jnp.stack(cs, axis=0)


def _check(model, x):
    ref_out, ref_h, ref_c = lstm_reference(model, x)
    out, next_state = model.forward(x, prev_state=None, list_next_state=True)
    out = jax.block_until_ready(out)
    next_state = jax.tree_util.tree_map(jax.block_until_ready, next_state)
    np.testing.assert_allclose(np.asarray(out), np.asarray(ref_out),
                               rtol=2e-2, atol=2e-2)
    h_stack = jnp.concatenate([d['h'] for d in next_state], axis=1)
    c_stack = jnp.concatenate([d['c'] for d in next_state], axis=1)
    np.testing.assert_allclose(np.asarray(h_stack), np.asarray(ref_h),
                               rtol=2e-2, atol=2e-2)
    np.testing.assert_allclose(np.asarray(c_stack), np.asarray(ref_c),
                               rtol=2e-2, atol=2e-2)
    return out, next_state


if __name__ == "__main__":
    seq_len, batch, input_size, hidden_size, num_layers = 8, 2, 16, 32, 2

    key = jax.random.PRNGKey(0)
    k_param, k_x, k_x2 = jax.random.split(key, 3)
    model = PallasLSTM(input_size, hidden_size, num_layers, k_param, t_blk=16)

    x = jax.random.normal(k_x, (seq_len, batch, input_size), dtype=jnp.float32)

    # Path 1: seq_len divisible by the (clamped) time-chunk; batch padded to 8.
    out, next_state = _check(model, x)

    # Path 2: ragged/masked path (t_blk does not divide seq_len).
    model.t_blk = 3
    _check(model, x)
    model.t_blk = 16

    # Path 3: batch large enough to split into two batch chunks (parallel axis).
    x_big = jax.random.normal(k_x2, (seq_len, 16, input_size), dtype=jnp.float32)
    _check(model, x_big)

    assert out.shape == (seq_len, batch, hidden_size)
    assert len(next_state) == batch
    assert next_state[0]['h'].shape == (num_layers, 1, hidden_size)

    print("KERNEL_OK")
</pallas_src>

<mosaic_0001>
module attributes {stable_mosaic.version = 11 : i64} {
  func.func @_lstm_recurrent_kernel(%arg0: i32, %arg1: i32, %arg2: memref<8x8x128xbf16, #tpu.memory_space<vmem>>, %arg3: memref<32x128xbf16, #tpu.memory_space<vmem>>, %arg4: memref<8x32xf32, #tpu.memory_space<vmem>>, %arg5: memref<8x32xf32, #tpu.memory_space<vmem>>, %arg6: memref<8x8x32xf32, #tpu.memory_space<vmem>>, %arg7: memref<8x32xf32, #tpu.memory_space<vmem>>, %arg8: memref<8x32xf32, #tpu.memory_space<vmem>>, %arg9: memref<8x32xf32, #tpu.memory_space<vmem>>, %arg10: memref<8x32xf32, #tpu.memory_space<vmem>>) attributes {dimension_semantics = [#tpu.dimension_semantics<parallel>, #tpu.dimension_semantics<arbitrary>], iteration_bounds = array<i64: 1, 1>, scalar_prefetch = 0 : i64, scratch_operands = 2 : i64, tpu.core_type = #tpu.core_type<tc>, window_params = [{transform_indices = @transform_0, window_bounds = array<i64: 8, 8, 128>}, {pipeline_mode = #tpu.pipeline_mode<synchronous>, transform_indices = @transform_1, window_bounds = array<i64: 32, 128>}, {pipeline_mode = #tpu.pipeline_mode<synchronous>, transform_indices = @transform_2, window_bounds = array<i64: 8, 32>}, {pipeline_mode = #tpu.pipeline_mode<synchronous>, transform_indices = @transform_3, window_bounds = array<i64: 8, 32>}, {transform_indices = @transform_4, window_bounds = array<i64: 8, 8, 32>}, {transform_indices = @transform_5, window_bounds = array<i64: 8, 32>}, {transform_indices = @transform_6, window_bounds = array<i64: 8, 32>}]} {
    %c0_i32 = arith.constant 0 : i32
    %0 = arith.cmpi eq, %arg1, %c0_i32 : i32
    %1 = arith.extui %0 : i1 to i32
    %c0_i32_0 = arith.constant 0 : i32
    %2 = arith.cmpi ne, %1, %c0_i32_0 : i32
    scf.if %2 {
      %c0_84 = arith.constant 0 : index
      %c0_85 = arith.constant 0 : index
      %283 = vector.load %arg4[%c0_84, %c0_85] : memref<8x32xf32, #tpu.memory_space<vmem>>, vector<8x32xf32>
      %c0_86 = arith.constant 0 : index
      %c0_87 = arith.constant 0 : index
      %284 = vector.load %arg9[%c0_86, %c0_87] : memref<8x32xf32, #tpu.memory_space<vmem>>, vector<8x32xf32>
      tpu.vector_store %arg9[%c0_86, %c0_87], %283 {strides = array<i32>} : memref<8x32xf32, #tpu.memory_space<vmem>>, vector<8x32xf32>,
      %c0_88 = arith.constant 0 : index
      %c0_89 = arith.constant 0 : index
      %285 = vector.load %arg5[%c0_88, %c0_89] : memref<8x32xf32, #tpu.memory_space<vmem>>, vector<8x32xf32>
      %c0_90 = arith.constant 0 : index
      %c0_91 = arith.constant 0 : index
      %286 = vector.load %arg10[%c0_90, %c0_91] : memref<8x32xf32, #tpu.memory_space<vmem>>, vector<8x32xf32>
      tpu.vector_store %arg10[%c0_90, %c0_91], %285 {strides = array<i32>} : memref<8x32xf32, #tpu.memory_space<vmem>>, vector<8x32xf32>,
    } else {
    }
    %c0 = arith.constant 0 : index
    %c0_1 = arith.constant 0 : index
    %3 = vector.load %arg3[%c0, %c0_1] : memref<32x128xbf16, #tpu.memory_space<vmem>>, vector<32x128xbf16>
    %c0_2 = arith.constant 0 : index
    %c0_3 = arith.constant 0 : index
    %4 = vector.load %arg9[%c0_2, %c0_3] : memref<8x32xf32, #tpu.memory_space<vmem>>, vector<8x32xf32>
    %c0_4 = arith.constant 0 : index
    %c0_5 = arith.constant 0 : index
    %5 = vector.load %arg10[%c0_4, %c0_5] : memref<8x32xf32, #tpu.memory_space<vmem>>, vector<8x32xf32>
    %c0_6 = arith.constant 0 : index
    %c0_7 = arith.constant 0 : index
    %c0_8 = arith.constant 0 : index
    %6 = vector.load %arg2[%c0_6, %c0_7, %c0_8] : memref<8x8x128xbf16, #tpu.memory_space<vmem>>, vector<1x8x128xbf16>
    %7 = vector.shape_cast %6 : vector<1x8x128xbf16> to vector<8x128xbf16>
    %8 = arith.extf %7 : vector<8x128xbf16> to vector<8x128xf32>
    %9 = arith.truncf %4 : vector<8x32xf32> to vector<8x32xbf16>
    %cst = arith.constant dense<0.000000e+00> : vector<8x128xf32>
    %10 = tpu.matmul %9, %3, %cst {dimension_numbers = #tpu.dot_dimension_numbers<[1], [0], [0], [1], [0, 0, 1, 1], [], []>} : vector<8x32xbf16>, vector<32x128xbf16>, vector<8x128xf32> -> vector<8x128xf32>
    %11 = arith.addf %8, %10 : vector<8x128xf32>
    %12 = vector.extract_strided_slice %11 {offsets = [0, 0], sizes = [8, 32], strides = [1, 1]} : vector<8x128xf32> to vector<8x32xf32>
    %13 = arith.negf %12 : vector<8x32xf32>
    %14 = math.exp %13 : vector<8x32xf32>
    %cst_9 = arith.constant 1.000000e+00 : f32
    %15 = vector.broadcast %cst_9 : f32 to vector<8x32xf32>
    %16 = arith.addf %15, %14 : vector<8x32xf32>
    %17 = arith.divf %15, %16 : vector<8x32xf32>
    %18 = vector.extract_strided_slice %11 {offsets = [0, 32], sizes = [8, 32], strides = [1, 1]} : vector<8x128xf32> to vector<8x32xf32>
    %19 = arith.negf %18 : vector<8x32xf32>
    %20 = math.exp %19 : vector<8x32xf32>
    %cst_10 = arith.constant 1.000000e+00 : f32
    %21 = vector.broadcast %cst_10 : f32 to vector<8x32xf32>
    %22 = arith.addf %21, %20 : vector<8x32xf32>
    %23 = arith.divf %21, %22 : vector<8x32xf32>
    %24 = vector.extract_strided_slice %11 {offsets = [0, 64], sizes = [8, 32], strides = [1, 1]} : vector<8x128xf32> to vector<8x32xf32>
    %25 = arith.negf %24 : vector<8x32xf32>
    %26 = math.exp %25 : vector<8x32xf32>
    %cst_11 = arith.constant 1.000000e+00 : f32
    %27 = vector.broadcast %cst_11 : f32 to vector<8x32xf32>
    %28 = arith.addf %27, %26 : vector<8x32xf32>
    %29 = arith.divf %27, %28 : vector<8x32xf32>
    %30 = vector.extract_strided_slice %11 {offsets = [0, 96], sizes = [8, 32], strides = [1, 1]} : vector<8x128xf32> to vector<8x32xf32>
    %31 = math.tanh %30 : vector<8x32xf32>
    %32 = arith.mulf %23, %5 : vector<8x32xf32>
    %33 = arith.mulf %17, %31 : vector<8x32xf32>
    %34 = arith.addf %32, %33 : vector<8x32xf32>
    %35 = math.tanh %34 : vector<8x32xf32>
    %36 = arith.mulf %29, %35 : vector<8x32xf32>
    %c0_12 = arith.constant 0 : index
    %c0_13 = arith.constant 0 : index
    %c0_14 = arith.constant 0 : index
    %37 = vector.load %arg6[%c0_12, %c0_13, %c0_14] : memref<8x8x32xf32, #tpu.memory_space<vmem>>, vector<1x8x32xf32>
    %38 = vector.shape_cast %37 : vector<1x8x32xf32> to vector<8x32xf32>
    %39 = vector.shape_cast %36 : vector<8x32xf32> to vector<1x8x32xf32>
    tpu.vector_store %arg6[%c0_12, %c0_13, %c0_14], %39 {strides = array<i32>} : memref<8x8x32xf32, #tpu.memory_space<vmem>>, vector<1x8x32xf32>,
    %c1 = arith.constant 1 : index
    %c0_15 = arith.constant 0 : index
    %c0_16 = arith.constant 0 : index
    %40 = vector.load %arg2[%c1, %c0_15, %c0_16] : memref<8x8x128xbf16, #tpu.memory_space<vmem>>, vector<1x8x128xbf16>
    %41 = vector.shape_cast %40 : vector<1x8x128xbf16> to vector<8x128xbf16>
    %42 = arith.extf %41 : vector<8x128xbf16> to vector<8x128xf32>
    %43 = arith.truncf %36 : vector<8x32xf32> to vector<8x32xbf16>
    %cst_17 = arith.constant dense<0.000000e+00> : vector<8x128xf32>
    %44 = tpu.matmul %43, %3, %cst_17 {dimension_numbers = #tpu.dot_dimension_numbers<[1], [0], [0], [1], [0, 0, 1, 1], [], []>} : vector<8x32xbf16>, vector<32x128xbf16>, vector<8x128xf32> -> vector<8x128xf32>
    %45 = arith.addf %42, %44 : vector<8x128xf32>
    %46 = vector.extract_strided_slice %45 {offsets = [0, 0], sizes = [8, 32], strides = [1, 1]} : vector<8x128xf32> to vector<8x32xf32>
    %47 = arith.negf %46 : vector<8x32xf32>
    %48 = math.exp %47 : vector<8x32xf32>
    %cst_18 = arith.constant 1.000000e+00 : f32
    %49 = vector.broadcast %cst_18 : f32 to vector<8x32xf32>
    %50 = arith.addf %49, %48 : vector<8x32xf32>
    %51 = arith.divf %49, %50 : vector<8x32xf32>
    %52 = vector.extract_strided_slice %45 {offsets = [0, 32], sizes = [8, 32], strides = [1, 1]} : vector<8x128xf32> to vector<8x32xf32>
    %53 = arith.negf %52 : vector<8x32xf32>
    %54 = math.exp %53 : vector<8x32xf32>
    %cst_19 = arith.constant 1.000000e+00 : f32
    %55 = vector.broadcast %cst_19 : f32 to vector<8x32xf32>
    %56 = arith.addf %55, %54 : vector<8x32xf32>
    %57 = arith.divf %55, %56 : vector<8x32xf32>
    %58 = vector.extract_strided_slice %45 {offsets = [0, 64], sizes = [8, 32], strides = [1, 1]} : vector<8x128xf32> to vector<8x32xf32>
    %59 = arith.negf %58 : vector<8x32xf32>
    %60 = math.exp %59 : vector<8x32xf32>
    %cst_20 = arith.constant 1.000000e+00 : f32
    %61 = vector.broadcast %cst_20 : f32 to vector<8x32xf32>
    %62 = arith.addf %61, %60 : vector<8x32xf32>
    %63 = arith.divf %61, %62 : vector<8x32xf32>
    %64 = vector.extract_strided_slice %45 {offsets = [0, 96], sizes = [8, 32], strides = [1, 1]} : vector<8x128xf32> to vector<8x32xf32>
    %65 = math.tanh %64 : vector<8x32xf32>
    %66 = arith.mulf %57, %34 : vector<8x32xf32>
    %67 = arith.mulf %51, %65 : vector<8x32xf32>
    %68 = arith.addf %66, %67 : vector<8x32xf32>
    %69 = math.tanh %68 : vector<8x32xf32>
    %70 = arith.mulf %63, %69 : vector<8x32xf32>
    %c1_21 = arith.constant 1 : index
    %c0_22 = arith.constant 0 : index
    %c0_23 = arith.constant 0 : index
    %71 = vector.load %arg6[%c1_21, %c0_22, %c0_23] : memref<8x8x32xf32, #tpu.memory_space<vmem>>, vector<1x8x32xf32>
    %72 = vector.shape_cast %71 : vector<1x8x32xf32> to vector<8x32xf32>
    %73 = vector.shape_cast %70 : vector<8x32xf32> to vector<1x8x32xf32>
    tpu.vector_store %arg6[%c1_21, %c0_22, %c0_23], %73 {strides = array<i32>} : memref<8x8x32xf32, #tpu.memory_space<vmem>>, vector<1x8x32xf32>,
    %c2 = arith.constant 2 : index
    %c0_24 = arith.constant 0 : index
    %c0_25 = arith.constant 0 : index
    %74 = vector.load %arg2[%c2, %c0_24, %c0_25] : memref<8x8x128xbf16, #tpu.memory_space<vmem>>, vector<1x8x128xbf16>
    %75 = vector.shape_cast %74 : vector<1x8x128xbf16> to vector<8x128xbf16>
    %76 = arith.extf %75 : vector<8x128xbf16> to vector<8x128xf32>
    %77 = arith.truncf %70 : vector<8x32xf32> to vector<8x32xbf16>
    %cst_26 = arith.constant dense<0.000000e+00> : vector<8x128xf32>
    %78 = tpu.matmul %77, %3, %cst_26 {dimension_numbers = #tpu.dot_dimension_numbers<[1], [0], [0], [1], [0, 0, 1, 1], [], []>} : vector<8x32xbf16>, vector<32x128xbf16>, vector<8x128xf32> -> vector<8x128xf32>
    %79 = arith.addf %76, %78 : vector<8x128xf32>
    %80 = vector.extract_strided_slice %79 {offsets = [0, 0], sizes = [8, 32], strides = [1, 1]} : vector<8x128xf32> to vector<8x32xf32>
    %81 = arith.negf %80 : vector<8x32xf32>
    %82 = math.exp %81 : vector<8x32xf32>
    %cst_27 = arith.constant 1.000000e+00 : f32
    %83 = vector.broadcast %cst_27 : f32 to vector<8x32xf32>
    %84 = arith.addf %83, %82 : vector<8x32xf32>
    %85 = arith.divf %83, %84 : vector<8x32xf32>
    %86 = vector.extract_strided_slice %79 {offsets = [0, 32], sizes = [8, 32], strides = [1, 1]} : vector<8x128xf32> to vector<8x32xf32>
    %87 = arith.negf %86 : vector<8x32xf32>
    %88 = math.exp %87 : vector<8x32xf32>
    %cst_28 = arith.constant 1.000000e+00 : f32
    %89 = vector.broadcast %cst_28 : f32 to vector<8x32xf32>
    %90 = arith.addf %89, %88 : vector<8x32xf32>
    %91 = arith.divf %89, %90 : vector<8x32xf32>
    %92 = vector.extract_strided_slice %79 {offsets = [0, 64], sizes = [8, 32], strides = [1, 1]} : vector<8x128xf32> to vector<8x32xf32>
    %93 = arith.negf %92 : vector<8x32xf32>
    %94 = math.exp %93 : vector<8x32xf32>
    %cst_29 = arith.constant 1.000000e+00 : f32
    %95 = vector.broadcast %cst_29 : f32 to vector<8x32xf32>
    %96 = arith.addf %95, %94 : vector<8x32xf32>
    %97 = arith.divf %95, %96 : vector<8x32xf32>
    %98 = vector.extract_strided_slice %79 {offsets = [0, 96], sizes = [8, 32], strides = [1, 1]} : vector<8x128xf32> to vector<8x32xf32>
    %99 = math.tanh %98 : vector<8x32xf32>
    %100 = arith.mulf %91, %68 : vector<8x32xf32>
    %101 = arith.mulf %85, %99 : vector<8x32xf32>
    %102 = arith.addf %100, %101 : vector<8x32xf32>
    %103 = math.tanh %102 : vector<8x32xf32>
    %104 = arith.mulf %97, %103 : vector<8x32xf32>
    %c2_30 = arith.constant 2 : index
    %c0_31 = arith.constant 0 : index
    %c0_32 = arith.constant 0 : index
    %105 = vector.load %arg6[%c2_30, %c0_31, %c0_32] : memref<8x8x32xf32, #tpu.memory_space<vmem>>, vector<1x8x32xf32>
    %106 = vector.shape_cast %105 : vector<1x8x32xf32> to vector<8x32xf32>
    %107 = vector.shape_cast %104 : vector<8x32xf32> to vector<1x8x32xf32>
    tpu.vector_store %arg6[%c2_30, %c0_31, %c0_32], %107 {strides = array<i32>} : memref<8x8x32xf32, #tpu.memory_space<vmem>>, vector<1x8x32xf32>,
    %c3 = arith.constant 3 : index
    %c0_33 = arith.constant 0 : index
    %c0_34 = arith.constant 0 : index
    %108 = vector.load %arg2[%c3, %c0_33, %c0_34] : memref<8x8x128xbf16, #tpu.memory_space<vmem>>, vector<1x8x128xbf16>
    %109 = vector.shape_cast %108 : vector<1x8x128xbf16> to vector<8x128xbf16>
    %110 = arith.extf %109 : vector<8x128xbf16> to vector<8x128xf32>
    %111 = arith.truncf %104 : vector<8x32xf32> to vector<8x32xbf16>
    %cst_35 = arith.constant dense<0.000000e+00> : vector<8x128xf32>
    %112 = tpu.matmul %111, %3, %cst_35 {dimension_numbers = #tpu.dot_dimension_numbers<[1], [0], [0], [1], [0, 0, 1, 1], [], []>} : vector<8x32xbf16>, vector<32x128xbf16>, vector<8x128xf32> -> vector<8x128xf32>
    %113 = arith.addf %110, %112 : vector<8x128xf32>
    %114 = vector.extract_strided_slice %113 {offsets = [0, 0], sizes = [8, 32], strides = [1, 1]} : vector<8x128xf32> to vector<8x32xf32>
    %115 = arith.negf %114 : vector<8x32xf32>
    %116 = math.exp %115 : vector<8x32xf32>
    %cst_36 = arith.constant 1.000000e+00 : f32
    %117 = vector.broadcast %cst_36 : f32 to vector<8x32xf32>
    %118 = arith.addf %117, %116 : vector<8x32xf32>
    %119 = arith.divf %117, %118 : vector<8x32xf32>
    %120 = vector.extract_strided_slice %113 {offsets = [0, 32], sizes = [8, 32], strides = [1, 1]} : vector<8x128xf32> to vector<8x32xf32>
    %121 = arith.negf %120 : vector<8x32xf32>
    %122 = math.exp %121 : vector<8x32xf32>
    %cst_37 = arith.constant 1.000000e+00 : f32
    %123 = vector.broadcast %cst_37 : f32 to vector<8x32xf32>
    %124 = arith.addf %123, %122 : vector<8x32xf32>
    %125 = arith.divf %123, %124 : vector<8x32xf32>
    %126 = vector.extract_strided_slice %113 {offsets = [0, 64], sizes = [8, 32], strides = [1, 1]} : vector<8x128xf32> to vector<8x32xf32>
    %127 = arith.negf %126 : vector<8x32xf32>
    %128 = math.exp %127 : vector<8x32xf32>
    %cst_38 = arith.constant 1.000000e+00 : f32
    %129 = vector.broadcast %cst_38 : f32 to vector<8x32xf32>
    %130 = arith.addf %129, %128 : vector<8x32xf32>
    %131 = arith.divf %129, %130 : vector<8x32xf32>
    %132 = vector.extract_strided_slice %113 {offsets = [0, 96], sizes = [8, 32], strides = [1, 1]} : vector<8x128xf32> to vector<8x32xf32>
    %133 = math.tanh %132 : vector<8x32xf32>
    %134 = arith.mulf %125, %102 : vector<8x32xf32>
    %135 = arith.mulf %119, %133 : vector<8x32xf32>
    %136 = arith.addf %134, %135 : vector<8x32xf32>
    %137 = math.tanh %136 : vector<8x32xf32>
    %138 = arith.mulf %131, %137 : vector<8x32xf32>
    %c3_39 = arith.constant 3 : index
    %c0_40 = arith.constant 0 : index
    %c0_41 = arith.constant 0 : index
    %139 = vector.load %arg6[%c3_39, %c0_40, %c0_41] : memref<8x8x32xf32, #tpu.memory_space<vmem>>, vector<1x8x32xf32>
    %140 = vector.shape_cast %139 : vector<1x8x32xf32> to vector<8x32xf32>
    %141 = vector.shape_cast %138 : vector<8x32xf32> to vector<1x8x32xf32>
    tpu.vector_store %arg6[%c3_39, %c0_40, %c0_41], %141 {strides = array<i32>} : memref<8x8x32xf32, #tpu.memory_space<vmem>>, vector<1x8x32xf32>,
    %c4 = arith.constant 4 : index
    %c0_42 = arith.constant 0 : index
    %c0_43 = arith.constant 0 : index
    %142 = vector.load %arg2[%c4, %c0_42, %c0_43] : memref<8x8x128xbf16, #tpu.memory_space<vmem>>, vector<1x8x128xbf16>
    %143 = vector.shape_cast %142 : vector<1x8x128xbf16> to vector<8x128xbf16>
    %144 = arith.extf %143 : vector<8x128xbf16> to vector<8x128xf32>
    %145 = arith.truncf %138 : vector<8x32xf32> to vector<8x32xbf16>
    %cst_44 = arith.constant dense<0.000000e+00> : vector<8x128xf32>
    %146 = tpu.matmul %145, %3, %cst_44 {dimension_numbers = #tpu.dot_dimension_numbers<[1], [0], [0], [1], [0, 0, 1, 1], [], []>} : vector<8x32xbf16>, vector<32x128xbf16>, vector<8x128xf32> -> vector<8x128xf32>
    %147 = arith.addf %144, %146 : vector<8x128xf32>
    %148 = vector.extract_strided_slice %147 {offsets = [0, 0], sizes = [8, 32], strides = [1, 1]} : vector<8x128xf32> to vector<8x32xf32>
    %149 = arith.negf %148 : vector<8x32xf32>
    %150 = math.exp %149 : vector<8x32xf32>
    %cst_45 = arith.constant 1.000000e+00 : f32
    %151 = vector.broadcast %cst_45 : f32 to vector<8x32xf32>
    %152 = arith.addf %151, %150 : vector<8x32xf32>
    %153 = arith.divf %151, %152 : vector<8x32xf32>
    %154 = vector.extract_strided_slice %147 {offsets = [0, 32], sizes = [8, 32], strides = [1, 1]} : vector<8x128xf32> to vector<8x32xf32>
    %155 = arith.negf %154 : vector<8x32xf32>
    %156 = math.exp %155 : vector<8x32xf32>
    %cst_46 = arith.constant 1.000000e+00 : f32
    %157 = vector.broadcast %cst_46 : f32 to vector<8x32xf32>
    %158 = arith.addf %157, %156 : vector<8x32xf32>
    %159 = arith.divf %157, %158 : vector<8x32xf32>
    %160 = vector.extract_strided_slice %147 {offsets = [0, 64], sizes = [8, 32], strides = [1, 1]} : vector<8x128xf32> to vector<8x32xf32>
    %161 = arith.negf %160 : vector<8x32xf32>
    %162 = math.exp %161 : vector<8x32xf32>
    %cst_47 = arith.constant 1.000000e+00 : f32
    %163 = vector.broadcast %cst_47 : f32 to vector<8x32xf32>
    %164 = arith.addf %163, %162 : vector<8x32xf32>
    %165 = arith.divf %163, %164 : vector<8x32xf32>
    %166 = vector.extract_strided_slice %147 {offsets = [0, 96], sizes = [8, 32], strides = [1, 1]} : vector<8x128xf32> to vector<8x32xf32>
    %167 = math.tanh %166 : vector<8x32xf32>
    %168 = arith.mulf %159, %136 : vector<8x32xf32>
    %169 = arith.mulf %153, %167 : vector<8x32xf32>
    %170 = arith.addf %168, %169 : vector<8x32xf32>
    %171 = math.tanh %170 : vector<8x32xf32>
    %172 = arith.mulf %165, %171 : vector<8x32xf32>
    %c4_48 = arith.constant 4 : index
    %c0_49 = arith.constant 0 : index
    %c0_50 = arith.constant 0 : index
    %173 = vector.load %arg6[%c4_48, %c0_49, %c0_50] : memref<8x8x32xf32, #tpu.memory_space<vmem>>, vector<1x8x32xf32>
    %174 = vector.shape_cast %173 : vector<1x8x32xf32> to vector<8x32xf32>
    %175 = vector.shape_cast %172 : vector<8x32xf32> to vector<1x8x32xf32>
    tpu.vector_store %arg6[%c4_48, %c0_49, %c0_50], %175 {strides = array<i32>} : memref<8x8x32xf32, #tpu.memory_space<vmem>>, vector<1x8x32xf32>,
    %c5 = arith.constant 5 : index
    %c0_51 = arith.constant 0 : index
    %c0_52 = arith.constant 0 : index
    %176 = vector.load %arg2[%c5, %c0_51, %c0_52] : memref<8x8x128xbf16, #tpu.memory_space<vmem>>, vector<1x8x128xbf16>
    %177 = vector.shape_cast %176 : vector<1x8x128xbf16> to vector<8x128xbf16>
    %178 = arith.extf %177 : vector<8x128xbf16> to vector<8x128xf32>
    %179 = arith.truncf %172 : vector<8x32xf32> to vector<8x32xbf16>
    %cst_53 = arith.constant dense<0.000000e+00> : vector<8x128xf32>
    %180 = tpu.matmul %179, %3, %cst_53 {dimension_numbers = #tpu.dot_dimension_numbers<[1], [0], [0], [1], [0, 0, 1, 1], [], []>} : vector<8x32xbf16>, vector<32x128xbf16>, vector<8x128xf32> -> vector<8x128xf32>
    %181 = arith.addf %178, %180 : vector<8x128xf32>
    %182 = vector.extract_strided_slice %181 {offsets = [0, 0], sizes = [8, 32], strides = [1, 1]} : vector<8x128xf32> to vector<8x32xf32>
    %183 = arith.negf %182 : vector<8x32xf32>
    %184 = math.exp %183 : vector<8x32xf32>
    %cst_54 = arith.constant 1.000000e+00 : f32
    %185 = vector.broadcast %cst_54 : f32 to vector<8x32xf32>
    %186 = arith.addf %185, %184 : vector<8x32xf32>
    %187 = arith.divf %185, %186 : vector<8x32xf32>
    %188 = vector.extract_strided_slice %181 {offsets = [0, 32], sizes = [8, 32], strides = [1, 1]} : vector<8x128xf32> to vector<8x32xf32>
    %189 = arith.negf %188 : vector<8x32xf32>
    %190 = math.exp %189 : vector<8x32xf32>
    %cst_55 = arith.constant 1.000000e+00 : f32
    %191 = vector.broadcast %cst_55 : f32 to vector<8x32xf32>
    %192 = arith.addf %191, %190 : vector<8x32xf32>
    %193 = arith.divf %191, %192 : vector<8x32xf32>
    %194 = vector.extract_strided_slice %181 {offsets = [0, 64], sizes = [8, 32], strides = [1, 1]} : vector<8x128xf32> to vector<8x32xf32>
    %195 = arith.negf %194 : vector<8x32xf32>
    %196 = math.exp %195 : vector<8x32xf32>
    %cst_56 = arith.constant 1.000000e+00 : f32
    %197 = vector.broadcast %cst_56 : f32 to vector<8x32xf32>
    %198 = arith.addf %197, %196 : vector<8x32xf32>
    %199 = arith.divf %197, %198 : vector<8x32xf32>
    %200 = vector.extract_strided_slice %181 {offsets = [0, 96], sizes = [8, 32], strides = [1, 1]} : vector<8x128xf32> to vector<8x32xf32>
    %201 = math.tanh %200 : vector<8x32xf32>
    %202 = arith.mulf %193, %170 : vector<8x32xf32>
    %203 = arith.mulf %187, %201 : vector<8x32xf32>
    %204 = arith.addf %202, %203 : vector<8x32xf32>
    %205 = math.tanh %204 : vector<8x32xf32>
    %206 = arith.mulf %199, %205 : vector<8x32xf32>
    %c5_57 = arith.constant 5 : index
    %c0_58 = arith.constant 0 : index
    %c0_59 = arith.constant 0 : index
    %207 = vector.load %arg6[%c5_57, %c0_58, %c0_59] : memref<8x8x32xf32, #tpu.memory_space<vmem>>, vector<1x8x32xf32>
    %208 = vector.shape_cast %207 : vector<1x8x32xf32> to vector<8x32xf32>
    %209 = vector.shape_cast %206 : vector<8x32xf32> to vector<1x8x32xf32>
    tpu.vector_store %arg6[%c5_57, %c0_58, %c0_59], %209 {strides = array<i32>} : memref<8x8x32xf32, #tpu.memory_space<vmem>>, vector<1x8x32xf32>,
    %c6 = arith.constant 6 : index
    %c0_60 = arith.constant 0 : index
    %c0_61 = arith.constant 0 : index
    %210 = vector.load %arg2[%c6, %c0_60, %c0_61] : memref<8x8x128xbf16, #tpu.memory_space<vmem>>, vector<1x8x128xbf16>
    %211 = vector.shape_cast %210 : vector<1x8x128xbf16> to vector<8x128xbf16>
    %212 = arith.extf %211 : vector<8x128xbf16> to vector<8x128xf32>
    %213 = arith.truncf %206 : vector<8x32xf32> to vector<8x32xbf16>
    %cst_62 = arith.constant dense<0.000000e+00> : vector<8x128xf32>
    %214 = tpu.matmul %213, %3, %cst_62 {dimension_numbers = #tpu.dot_dimension_numbers<[1], [0], [0], [1], [0, 0, 1, 1], [], []>} : vector<8x32xbf16>, vector<32x128xbf16>, vector<8x128xf32> -> vector<8x128xf32>
    %215 = arith.addf %212, %214 : vector<8x128xf32>
    %216 = vector.extract_strided_slice %215 {offsets = [0, 0], sizes = [8, 32], strides = [1, 1]} : vector<8x128xf32> to vector<8x32xf32>
    %217 = arith.negf %216 : vector<8x32xf32>
    %218 = math.exp %217 : vector<8x32xf32>
    %cst_63 = arith.constant 1.000000e+00 : f32
    %219 = vector.broadcast %cst_63 : f32 to vector<8x32xf32>
    %220 = arith.addf %219, %218 : vector<8x32xf32>
    %221 = arith.divf %219, %220 : vector<8x32xf32>
    %222 = vector.extract_strided_slice %215 {offsets = [0, 32], sizes = [8, 32], strides = [1, 1]} : vector<8x128xf32> to vector<8x32xf32>
    %223 = arith.negf %222 : vector<8x32xf32>
    %224 = math.exp %223 : vector<8x32xf32>
    %cst_64 = arith.constant 1.000000e+00 : f32
    %225 = vector.broadcast %cst_64 : f32 to vector<8x32xf32>
    %226 = arith.addf %225, %224 : vector<8x32xf32>
    %227 = arith.divf %225, %226 : vector<8x32xf32>
    %228 = vector.extract_strided_slice %215 {offsets = [0, 64], sizes = [8, 32], strides = [1, 1]} : vector<8x128xf32> to vector<8x32xf32>
    %229 = arith.negf %228 : vector<8x32xf32>
    %230 = math.exp %229 : vector<8x32xf32>
    %cst_65 = arith.constant 1.000000e+00 : f32
    %231 = vector.broadcast %cst_65 : f32 to vector<8x32xf32>
    %232 = arith.addf %231, %230 : vector<8x32xf32>
    %233 = arith.divf %231, %232 : vector<8x32xf32>
    %234 = vector.extract_strided_slice %215 {offsets = [0, 96], sizes = [8, 32], strides = [1, 1]} : vector<8x128xf32> to vector<8x32xf32>
    %235 = math.tanh %234 : vector<8x32xf32>
    %236 = arith.mulf %227, %204 : vector<8x32xf32>
    %237 = arith.mulf %221, %235 : vector<8x32xf32>
    %238 = arith.addf %236, %237 : vector<8x32xf32>
    %239 = math.tanh %238 : vector<8x32xf32>
    %240 = arith.mulf %233, %239 : vector<8x32xf32>
    %c6_66 = arith.constant 6 : index
    %c0_67 = arith.constant 0 : index
    %c0_68 = arith.constant 0 : index
    %241 = vector.load %arg6[%c6_66, %c0_67, %c0_68] : memref<8x8x32xf32, #tpu.memory_space<vmem>>, vector<1x8x32xf32>
    %242 = vector.shape_cast %241 : vector<1x8x32xf32> to vector<8x32xf32>
    %243 = vector.shape_cast %240 : vector<8x32xf32> to vector<1x8x32xf32>
    tpu.vector_store %arg6[%c6_66, %c0_67, %c0_68], %243 {strides = array<i32>} : memref<8x8x32xf32, #tpu.memory_space<vmem>>, vector<1x8x32xf32>,
    %c7 = arith.constant 7 : index
    %c0_69 = arith.constant 0 : index
    %c0_70 = arith.constant 0 : index
    %244 = vector.load %arg2[%c7, %c0_69, %c0_70] : memref<8x8x128xbf16, #tpu.memory_space<vmem>>, vector<1x8x128xbf16>
    %245 = vector.shape_cast %244 : vector<1x8x128xbf16> to vector<8x128xbf16>
    %246 = arith.extf %245 : vector<8x128xbf16> to vector<8x128xf32>
    %247 = arith.truncf %240 : vector<8x32xf32> to vector<8x32xbf16>
    %cst_71 = arith.constant dense<0.000000e+00> : vector<8x128xf32>
    %248 = tpu.matmul %247, %3, %cst_71 {dimension_numbers = #tpu.dot_dimension_numbers<[1], [0], [0], [1], [0, 0, 1, 1], [], []>} : vector<8x32xbf16>, vector<32x128xbf16>, vector<8x128xf32> -> vector<8x128xf32>
    %249 = arith.addf %246, %248 : vector<8x128xf32>
    %250 = vector.extract_strided_slice %249 {offsets = [0, 0], sizes = [8, 32], strides = [1, 1]} : vector<8x128xf32> to vector<8x32xf32>
    %251 = arith.negf %250 : vector<8x32xf32>
    %252 = math.exp %251 : vector<8x32xf32>
    %cst_72 = arith.constant 1.000000e+00 : f32
    %253 = vector.broadcast %cst_72 : f32 to vector<8x32xf32>
    %254 = arith.addf %253, %252 : vector<8x32xf32>
    %255 = arith.divf %253, %254 : vector<8x32xf32>
    %256 = vector.extract_strided_slice %249 {offsets = [0, 32], sizes = [8, 32], strides = [1, 1]} : vector<8x128xf32> to vector<8x32xf32>
    %257 = arith.negf %256 : vector<8x32xf32>
    %258 = math.exp %257 : vector<8x32xf32>
    %cst_73 = arith.constant 1.000000e+00 : f32
    %259 = vector.broadcast %cst_73 : f32 to vector<8x32xf32>
    %260 = arith.addf %259, %258 : vector<8x32xf32>
    %261 = arith.divf %259, %260 : vector<8x32xf32>
    %262 = vector.extract_strided_slice %249 {offsets = [0, 64], sizes = [8, 32], strides = [1, 1]} : vector<8x128xf32> to vector<8x32xf32>
    %263 = arith.negf %262 : vector<8x32xf32>
    %264 = math.exp %263 : vector<8x32xf32>
    %cst_74 = arith.constant 1.000000e+00 : f32
    %265 = vector.broadcast %cst_74 : f32 to vector<8x32xf32>
    %266 = arith.addf %265, %264 : vector<8x32xf32>
    %267 = arith.divf %265, %266 : vector<8x32xf32>
    %268 = vector.extract_strided_slice %249 {offsets = [0, 96], sizes = [8, 32], strides = [1, 1]} : vector<8x128xf32> to vector<8x32xf32>
    %269 = math.tanh %268 : vector<8x32xf32>
    %270 = arith.mulf %261, %238 : vector<8x32xf32>
    %271 = arith.mulf %255, %269 : vector<8x32xf32>
    %272 = arith.addf %270, %271 : vector<8x32xf32>
    %273 = math.tanh %272 : vector<8x32xf32>
    %274 = arith.mulf %267, %273 : vector<8x32xf32>
    %c7_75 = arith.constant 7 : index
    %c0_76 = arith.constant 0 : index
    %c0_77 = arith.constant 0 : index
    %275 = vector.load %arg6[%c7_75, %c0_76, %c0_77] : memref<8x8x32xf32, #tpu.memory_space<vmem>>, vector<1x8x32xf32>
    %276 = vector.shape_cast %275 : vector<1x8x32xf32> to vector<8x32xf32>
    %277 = vector.shape_cast %274 : vector<8x32xf32> to vector<1x8x32xf32>
    tpu.vector_store %arg6[%c7_75, %c0_76, %c0_77], %277 {strides = array<i32>} : memref<8x8x32xf32, #tpu.memory_space<vmem>>, vector<1x8x32xf32>,
    %c0_78 = arith.constant 0 : index
    %c0_79 = arith.constant 0 : index
    %278 = vector.load %arg9[%c0_78, %c0_79] : memref<8x32xf32, #tpu.memory_space<vmem>>, vector<8x32xf32>
    tpu.vector_store %arg9[%c0_78, %c0_79], %274 {strides = array<i32>} : memref<8x32xf32, #tpu.memory_space<vmem>>, vector<8x32xf32>,
    %c0_80 = arith.constant 0 : index
    %c0_81 = arith.constant 0 : index
    %279 = vector.load %arg10[%c0_80, %c0_81] : memref<8x32xf32, #tpu.memory_space<vmem>>, vector<8x32xf32>
    tpu.vector_store %arg10[%c0_80, %c0_81], %272 {strides = array<i32>} : memref<8x32xf32, #tpu.memory_space<vmem>>, vector<8x32xf32>,
    %c0_i32_82 = arith.constant 0 : i32
    %280 = arith.cmpi eq, %arg1, %c0_i32_82 : i32
    %281 = arith.extui %280 : i1 to i32
    %c0_i32_83 = arith.constant 0 : i32
    %282 = arith.cmpi ne, %281, %c0_i32_83 : i32
    scf.if %282 {
      %c0_84 = arith.constant 0 : index
      %c0_85 = arith.constant 0 : index
      %283 = vector.load %arg7[%c0_84, %c0_85] : memref<8x32xf32, #tpu.memory_space<vmem>>, vector<8x32xf32>
      tpu.vector_store %arg7[%c0_84, %c0_85], %274 {strides = array<i32>} : memref<8x32xf32, #tpu.memory_space<vmem>>, vector<8x32xf32>,
      %c0_86 = arith.constant 0 : index
      %c0_87 = arith.constant 0 : index
      %284 = vector.load %arg8[%c0_86, %c0_87] : memref<8x32xf32, #tpu.memory_space<vmem>>, vector<8x32xf32>
      tpu.vector_store %arg8[%c0_86, %c0_87], %272 {strides = array<i32>} : memref<8x32xf32, #tpu.memory_space<vmem>>, vector<8x32xf32>,
    } else {
    }
    return
  }
  func.func @transform_0(%arg0: i32, %arg1: i32) -> (i32, i32, i32) {
    %c0_i32 = arith.constant 0 : i32
    %c0_i32_0 = arith.constant 0 : i32
    return %arg1, %arg0, %c0_i32 : i32, i32, i32
  }
  func.func @transform_1(%arg0: i32, %arg1: i32) -> (i32, i32) {
    %c0_i32 = arith.constant 0 : i32
    %c0_i32_0 = arith.constant 0 : i32
    %c0_i32_1 = arith.constant 0 : i32
    return %c0_i32, %c0_i32_0 : i32, i32
  }
  func.func @transform_2(%arg0: i32, %arg1: i32) -> (i32, i32) {
    %c0_i32 = arith.constant 0 : i32
    %c0_i32_0 = arith.constant 0 : i32
    return %arg0, %c0_i32 : i32, i32
  }
  func.func @transform_3(%arg0: i32, %arg1: i32) -> (i32, i32) {
    %c0_i32 = arith.constant 0 : i32
    %c0_i32_0 = arith.constant 0 : i32
    return %arg0, %c0_i32 : i32, i32
  }
  func.func @transform_4(%arg0: i32, %arg1: i32) -> (i32, i32, i32) {
    %c0_i32 = arith.constant 0 : i32
    %c0_i32_0 = arith.constant 0 : i32
    return %arg1, %arg0, %c0_i32 : i32, i32, i32
  }
  func.func @transform_5(%arg0: i32, %arg1: i32) -> (i32, i32) {
    %c0_i32 = arith.constant 0 : i32
    %c0_i32_0 = arith.constant 0 : i32
    return %arg0, %c0_i32 : i32, i32
  }
  func.func @transform_6(%arg0: i32, %arg1: i32) -> (i32, i32) {
    %c0_i32 = arith.constant 0 : i32
    %c0_i32_0 = arith.constant 0 : i32
    return %arg0, %c0_i32 : i32, i32
  }
}

</mosaic_0001>

<bundles_post_ra>
// kernel: tpu_custom_call.1
= control target key start
LH: loop header
LB: loop body
LE: loop exit
PB: predicated region body
PF: predicated region fallthrough
CT: control target
= control target key end

     0   :  { %12 = vsyncpa [#allocation5], 0  ;;  %s1154_s0 = inlined_call_operand.hbm [shape: bf16[8,8,128], index: 0, kind: input, shape index: {}]   ;;  %s1155_s1 = inlined_call_operand.hbm [shape: bf16[32,128], index: 1, kind: input, shape index: {}]   ;;  %s1156_s2 = inlined_call_operand.hbm [shape: f32[8,32], index: 2, kind: input, shape index: {}]   ;;  %s1157_s3 = inlined_call_operand.hbm [shape: f32[8,32], index: 3, kind: input, shape index: {}]   ;;  %s1158_s4 = inlined_call_operand.hbm [shape: f32[8,8,32], index: 4, kind: output, shape index: {0}]   ;;  %s1159_s5 = inlined_call_operand.hbm [shape: f32[8,32], index: 5, kind: output, shape index: {1}]   ;;  %s1160_s6 = inlined_call_operand.hbm [shape: f32[8,32], index: 6, kind: output, shape index: {2}]  }
   0x1   :  { %13 = vsyncpa [#allocation8], 0 }
   0x2   :  { %14 = vsyncpa [#allocation11], 0 }
   0x3   :  { %15 = vsyncpa [#allocation6], 0 }
   0x4   :  { %16 = vsyncpa [#allocation14], 0  ;;  %s34_s23 = sshll.u32 %s1155_s1, 4  ;;  %s989_s24 = smov [#allocation7]   ;;  %s35_s23 = int_to_ptr.hbm [resolvable:$true] %s34_s23 }
   0x5   :  { %s36_s25 = sshll.u32 %s989_s24, 4  ;;  %s21_s28 = sshll.u32 %s1154_s0, 4  ;;  %s37_s25 = int_to_ptr.vmem [resolvable:$true] %s36_s25  ;;  %s22_s28 = int_to_ptr.hbm [resolvable:$true] %s21_s28 }
   0x6   :  { %s990_s29 = smov 64   ;;  %s991_s30 = smov 4  }
   0x7   :  { %42 = dma.hbm_to_vmem [thread:$0]  %s35_s23, 256, %s37_s25, [#allocation8], %s990_s29, %s990_s29, %s991_s30  }
   0x8   :  { %s992_s7 = smov [#allocation4]   ;;  %s48_s1 = sshll.u32 %s1156_s2, 4  ;;  %s49_s1 = int_to_ptr.hbm [resolvable:$true] %s48_s1 }
   0x9   :  { %s23_s8 = sshll.u32 %s992_s7, 4  ;;  %s59_s0 = sshll.u32 %s1157_s3, 4  ;;  %s24_s8 = int_to_ptr.vmem [resolvable:$true] %s23_s8  ;;  %s60_s0 = int_to_ptr.hbm [resolvable:$true] %s59_s0 }
   0xa   :  { %29 = dma.hbm_to_vmem [thread:$0]  %s22_s28, 512, %s24_s8, [#allocation5], %s990_s29, %s990_s29, %s991_s30  }
   0xb   :  { %s993_s13 = smov [#allocation9]   ;;  %s994_s15 = smov [#allocation10]  }
   0xc   :  { %s50_s14 = sshll.u32 %s993_s13, 4  ;;  %s61_s16 = sshll.u32 %s994_s15, 4  ;;  %s51_s14 = int_to_ptr.vmem [resolvable:$true] %s50_s14  ;;  %s62_s16 = int_to_ptr.vmem [resolvable:$true] %s61_s16 }
   0xd   :  { %53 = dma.hbm_to_vmem [thread:$0]  %s49_s1, 128, %s51_s14, [#allocation8]  }
   0xe   :  { %64 = dma.hbm_to_vmem [thread:$0]  %s60_s0, 128, %s62_s16, [#allocation11]  }
   0xf   :  { %979 = dma.done.wait [#allocation5], 512  }
  0x10   :  { %980 = vsyncadd [#allocation5], 4294966784 }
  0x11   :  { %981 = dma.done.wait [#allocation8], 384  }
  0x12   :  { %982 = vsyncadd [#allocation8], 4294966912 }
  0x13   :  { %983 = dma.done.wait [#allocation11], 128  }
  0x14   :  { %984 = vsyncadd [#allocation11], 4294967168  ;;  %vm87_vm0 = vcmask 261120   ;;  %v733_v0 = vld [vmem:[#allocation7 + $0x8] sm:$0xff]  ;;  %v86_v1 = vld [vmem:[#allocation9] sm:$0xff]  ;;  %s995_s2 = smov 32  }
  0x15   :  { %88 = vst.msk [vmem:[#allocation2] sm:$0xff] %vm87_vm0, %v86_v1  ;;  %122 = vmatpush.bf16.msra.mxu0 %v733_v0  ;;  %v732_v2 = vld [vmem:[#allocation7] sm:$0xff]  ;;  %192 = vmatpush.bf16.msra.mxu1 %v733_v0  ;;  %v89_v5 = vld [vmem:[#allocation10] sm:$0xff]  ;;  %v244_v1 = vld [vmem:[#allocation4 + $0x8] sm:$0xff]   ;;  %s996_s3 = smov 96   ;;  %s997_s17 = smov [#allocation13]  }
  0x16   :  { %259 = vmatpush.bf16.msra.mxu2 %v733_v0  ;;  %326 = vmatpush.bf16.msra.mxu3 %v733_v0  ;;  %90 = vst.msk [vmem:[#allocation3] sm:$0xff] %vm87_vm0, %v89_v5  ;;  %v97_v6 = vld [vmem:[#allocation4] sm:$0xff]   ;;  %s674_s18 = sshll.u32 %s997_s17, 4  ;;  %s676_s21 = sshll.u32 %s1159_s5, 4  ;;  %s675_s18 = int_to_ptr.vmem [resolvable:$true] %s674_s18  ;;  %s677_s21 = int_to_ptr.hbm [resolvable:$true] %s676_s21 }
  0x17   :  { %v98_v7 = vunpack.c.l.bf16 %v97_v6  ;;  %v178_v37 = vunpack.c.h.bf16 %v97_v6  ;;  %s998_s22 = smov [#allocation15]   ;;  %s687_s26 = sshll.u32 %s1160_s6, 4  ;;  %s688_s26 = int_to_ptr.hbm [resolvable:$true] %s687_s26 }
  0x18   :  { %s685_s23 = sshll.u32 %s998_s22, 4  ;;  %s999_s27 = smov [#allocation12]   ;;  %s686_s23 = int_to_ptr.vmem [resolvable:$true] %s685_s23 }
  0x19   :  { %123 = vmatpush.bf16.msra.mxu0 %v732_v2  ;;  %193 = vmatpush.bf16.msra.mxu1 %v732_v2  ;;  %s660_s28 = sshll.u32 %s999_s27, 4  ;;  %s662_s30 = sshll.u32 %s1158_s4, 4  ;;  %s661_s28 = int_to_ptr.vmem [resolvable:$true] %s660_s28  ;;  %s663_s30 = int_to_ptr.hbm [resolvable:$true] %s662_s30 }
  0x1a   :  { %260 = vmatpush.bf16.msra.mxu2 %v732_v2  ;;  %327 = vmatpush.bf16.msra.mxu3 %v732_v2  ;;  %s1000_s6 = smov 128   ;;  %s1001_s7 = smov 8  }
  0x1c   :  { %v95_v3 = vld [vmem:[#allocation2] sm:$0xff] }
  0x1d   :  { %393 = vmatpush.bf16.msrb.mxu0 %v733_v0  ;;  %460 = vmatpush.bf16.msrb.mxu1 %v733_v0  ;;  %v99_v4 = vpack.c.bf16 %v95_v3, %v95_v3  ;;  %v96_v12 = vld [vmem:[#allocation3] sm:$0xff] }
  0x1e   :  { %527 = vmatpush.bf16.msrb.mxu2 %v733_v0  ;;  %594 = vmatpush.bf16.msrb.mxu3 %v733_v0 }
  0x1f   :  { %716 = vmatmul.msk.bf16.vlgmr.msra.gmra.mxu0 %vm87_vm0, %v99_v4 }
  0x21   :  { %394 = vmatpush.bf16.msrb.mxu0 %v732_v2  ;;  %461 = vmatpush.bf16.msrb.mxu1 %v732_v2 }
  0x22   :  { %528 = vmatpush.bf16.msrb.mxu2 %v732_v2  ;;  %595 = vmatpush.bf16.msrb.mxu3 %v732_v2  ;;  %v245_v2 = vunpack.c.l.bf16 %v244_v1 }
  0x9c   :  { %v125_v8 = vpop.f32.mrf.mxu0 }
  0x9d   :  { %v129_v9 = vadd.f32 %v125_v8, %v98_v7 }
  0x9f   :  { %747 = vtanh.f32 %v129_v9  ;;  %v717_v13 = vmul.f32 -1.442695, %v129_v9 }
  0xa1   :  { %749 = vpow2.f32 %v717_v13 }
  0xa4   :  { %v127_v10 = vpop.f32.mrf.mxu0 }
  0xa5   :  { %v748_v11 = vpop.eup %747 }
  0xa6   :  { %156 = vrot.lane.b32.xlu0 %v748_v11, %s995_s2 }
  0xa7   :  { %v750_v14 = vpop.eup %749 }
  0xa8   :  { %v133_v15 = vadd.f32 1.0, %v750_v14 }
  0xaa   :  { %751 = vrcp.f32 %v133_v15  ;;  %v145_v21 = vand.u32 2147483648, %v133_v15  ;;  %vm139_vm2 = vweird.f32 %v133_v15  ;;  %v143_v22 = vand.u32 2147483647, %v133_v15 }
  0xac   :  { %v146_v24 = vor.u32 1.1754944e-38, %v145_v21  ;;  %vm144_vm4 = vcmp.eq.f32.partialorder %v143_v22, 8.507059e+37 }
  0xae   :  { %151 = vrot.lane.b32.xlu0 %v96_v12, %s995_s2 }
  0xb0   :  { %v752_v16 = vpop.eup %751 }
  0xb1   :  { %v135_v17 = vmul.f32 %v752_v16, %v133_v15  ;;  %vm140_vm1 = vweird.f32 %v752_v16 }
  0xb2   :  { %vm141_vm3 = vmor %vm139_vm2, %vm140_vm1 }
  0xb3   :  { %v136_v18 = vsub.f32 1.0, %v135_v17 }
  0xb5   :  { %v137_v19 = vmul.f32 %v752_v16, %v136_v18 }
  0xb7   :  { %v138_v20 = vadd.f32 %v752_v16, %v137_v19 }
  0xb9   :  { %v142_v23 = vsel %vm141_vm3, %v752_v16, %v138_v20 }
  0xba   :  { %v147_v26 = vsel %vm144_vm4, %v146_v24, %v142_v23 }
 0x118   :  { %v157_v25 = vpop.permute.xlu0 %156 }
 0x119   :  { %v159_v27 = vmul.f32 %v157_v25, %v147_v26 }
 0x11b   :  { %161 = vrot.lane.b32.xlu1 %v159_v27, %s995_s2 }
 0x120   :  { %v152_v28 = vpop.permute.xlu0 %151 }
 0x121   :  { %v154_v29 = vmul.f32 %v152_v28, %v147_v26 }
 0x18d   :  { %v162_v30 = vpop.permute.xlu1 %161 }
 0x18e   :  { %v164_v31 = vadd.f32 %v162_v30, %v154_v29  ;;  %v312_v30 = vunpack.c.h.bf16 %v244_v1 }
 0x190   :  { %753 = vtanh.f32 %v164_v31 }
 0x196   :  { %v754_v32 = vpop.eup %753 }
 0x197   :  { %167 = vrot.lane.b32.xlu1 %v754_v32, %s995_s2 }
 0x209   :  { %v168_v33 = vpop.permute.xlu1 %167 }
 0x20a   :  { %v1060_v34 = vmul.f32 %v168_v33, %v147_v26 }
 0x20c   :  { %v179_v35 = vpack.c.bf16 %v1060_v34, %v1060_v34 }
 0x20e   :  { %181 = vrot.lane.b32.xlu2 %v179_v35, %s990_s29 }
 0x268   :  { %v182_v36 = vpop.permute.xlu2 %181 }
 0x269   :  { %718 = vmatmul.msk.bf16.vlgmr.msra.gmra.mxu1 %vm87_vm0, %v182_v36 }
 0x2e6   :  { %v195_v38 = vpop.f32.mrf.mxu1 }
 0x2e7   :  { %v199_v39 = vadd.f32 %v195_v38, %v178_v37 }
 0x2e9   :  { %755 = vtanh.f32 %v199_v39  ;;  %v719_v42 = vmul.f32 -1.442695, %v199_v39 }
 0x2eb   :  { %757 = vpow2.f32 %v719_v42 }
 0x2ee   :  { %v197_v40 = vpop.f32.mrf.mxu1 }
 0x2ef   :  { %v756_v41 = vpop.eup %755 }
 0x2f0   :  { %222 = vrot.lane.b32.xlu2 %v756_v41, %s995_s2 }
 0x2f1   :  { %v758_v43 = vpop.eup %757 }
 0x2f2   :  { %v203_v44 = vadd.f32 1.0, %v758_v43 }
 0x2f4   :  { %759 = vrcp.f32 %v203_v44  ;;  %v215_v50 = vand.u32 2147483648, %v203_v44  ;;  %vm209_vm6 = vweird.f32 %v203_v44  ;;  %v213_v51 = vand.u32 2147483647, %v203_v44 }
 0x2f6   :  { %v216_v53 = vor.u32 1.1754944e-38, %v215_v50  ;;  %vm214_vm8 = vcmp.eq.f32.partialorder %v213_v51, 8.507059e+37 }
 0x2fa   :  { %v760_v45 = vpop.eup %759 }
 0x2fb   :  { %v205_v46 = vmul.f32 %v760_v45, %v203_v44  ;;  %vm210_vm5 = vweird.f32 %v760_v45 }
 0x2fc   :  { %vm211_vm7 = vmor %vm209_vm6, %vm210_vm5 }
 0x2fd   :  { %v206_v47 = vsub.f32 1.0, %v205_v46 }
 0x2ff   :  { %v207_v48 = vmul.f32 %v760_v45, %v206_v47 }
 0x301   :  { %v208_v49 = vadd.f32 %v760_v45, %v207_v48 }
 0x303   :  { %v212_v52 = vsel %vm211_vm7, %v760_v45, %v208_v49 }
 0x304   :  { %v217_v55 = vsel %vm214_vm8, %v216_v53, %v212_v52 }
 0x305   :  { %v220_v57 = vmul.f32 %v217_v55, %v164_v31 }
 0x34a   :  { %v223_v54 = vpop.permute.xlu2 %222 }
 0x34b   :  { %v225_v56 = vmul.f32 %v223_v54, %v217_v55 }
 0x34d   :  { %227 = vrot.lane.b32.xlu0 %v225_v56, %s995_s2 }
 0x3bf   :  { %v228_v58 = vpop.permute.xlu0 %227 }
 0x3c0   :  { %v230_v59 = vadd.f32 %v228_v58, %v220_v57 }
 0x3c2   :  { %761 = vtanh.f32 %v230_v59 }
 0x3c8   :  { %v762_v60 = vpop.eup %761 }
 0x3c9   :  { %233 = vrot.lane.b32.xlu1 %v762_v60, %s995_s2 }
 0x43b   :  { %v234_v61 = vpop.permute.xlu1 %233 }
 0x43c   :  { %v1069_v62 = vmul.f32 %v234_v61, %v217_v55 }
 0x43e   :  { %v246_v63 = vpack.c.bf16 %v1069_v62, %v1069_v62 }
 0x440   :  { %248 = vrot.lane.b32.xlu2 %v246_v63, %s990_s29 }
 0x49a   :  { %v249_v0 = vpop.permute.xlu2 %248 }
 0x49b   :  { %720 = vmatmul.msk.bf16.vlgmr.msra.gmra.mxu2 %vm87_vm0, %v249_v0 }
 0x51e   :  { %v262_v3 = vpop.f32.mrf.mxu2 }
 0x51f   :  { %v266_v4 = vadd.f32 %v262_v3, %v245_v2 }
 0x521   :  { %763 = vtanh.f32 %v266_v4  ;;  %v721_v7 = vmul.f32 -1.442695, %v266_v4 }
 0x523   :  { %765 = vpow2.f32 %v721_v7 }
 0x526   :  { %v264_v5 = vpop.f32.mrf.mxu2 }
 0x527   :  { %v764_v6 = vpop.eup %763 }
 0x528   :  { %289 = vrot.lane.b32.xlu0 %v764_v6, %s995_s2 }
 0x529   :  { %v766_v8 = vpop.eup %765 }
 0x52a   :  { %v270_v9 = vadd.f32 1.0, %v766_v8 }
 0x52c   :  { %767 = vrcp.f32 %v270_v9  ;;  %v282_v15 = vand.u32 2147483648, %v270_v9  ;;  %vm276_vm10 = vweird.f32 %v270_v9  ;;  %v280_v16 = vand.u32 2147483647, %v270_v9 }
 0x52e   :  { %v283_v18 = vor.u32 1.1754944e-38, %v282_v15  ;;  %vm281_vm12 = vcmp.eq.f32.partialorder %v280_v16, 8.507059e+37 }
 0x532   :  { %v768_v10 = vpop.eup %767 }
 0x533   :  { %v272_v11 = vmul.f32 %v768_v10, %v270_v9  ;;  %vm277_vm9 = vweird.f32 %v768_v10 }
 0x534   :  { %vm278_vm11 = vmor %vm276_vm10, %vm277_vm9 }
 0x535   :  { %v273_v12 = vsub.f32 1.0, %v272_v11 }
 0x537   :  { %v274_v13 = vmul.f32 %v768_v10, %v273_v12 }
 0x539   :  { %v275_v14 = vadd.f32 %v768_v10, %v274_v13 }
 0x53b   :  { %v279_v17 = vsel %vm278_vm11, %v768_v10, %v275_v14 }
 0x53c   :  { %v284_v20 = vsel %vm281_vm12, %v283_v18, %v279_v17 }
 0x53d   :  { %v287_v22 = vmul.f32 %v284_v20, %v230_v59  ;;  %v378_v59 = vld [vmem:[#allocation4 + $0x10] sm:$0xff]  }
 0x53e   :  { %v379_v60 = vunpack.c.l.bf16 %v378_v59 }
 0x59a   :  { %v290_v19 = vpop.permute.xlu0 %289 }
 0x59b   :  { %v292_v21 = vmul.f32 %v290_v19, %v284_v20 }
 0x59d   :  { %294 = vrot.lane.b32.xlu1 %v292_v21, %s995_s2 }
 0x60f   :  { %v295_v23 = vpop.permute.xlu1 %294 }
 0x610   :  { %v297_v24 = vadd.f32 %v295_v23, %v287_v22 }
 0x612   :  { %769 = vtanh.f32 %v297_v24 }
 0x618   :  { %v770_v25 = vpop.eup %769 }
 0x619   :  { %300 = vrot.lane.b32.xlu2 %v770_v25, %s995_s2  ;;  %v446_v25 = vunpack.c.h.bf16 %v378_v59 }
 0x673   :  { %v301_v26 = vpop.permute.xlu2 %300 }
 0x674   :  { %v1078_v27 = vmul.f32 %v301_v26, %v284_v20 }
 0x676   :  { %v313_v28 = vpack.c.bf16 %v1078_v27, %v1078_v27 }
 0x678   :  { %315 = vrot.lane.b32.xlu0 %v313_v28, %s990_s29 }
 0x6ea   :  { %v316_v29 = vpop.permute.xlu0 %315 }
 0x6eb   :  { %722 = vmatmul.msk.bf16.vlgmr.msra.gmra.mxu3 %vm87_vm0, %v316_v29 }
 0x76e   :  { %v329_v31 = vpop.f32.mrf.mxu3 }
 0x76f   :  { %v333_v32 = vadd.f32 %v329_v31, %v312_v30 }
 0x771   :  { %771 = vtanh.f32 %v333_v32  ;;  %v723_v36 = vmul.f32 -1.442695, %v333_v32 }
 0x773   :  { %773 = vpow2.f32 %v723_v36 }
 0x776   :  { %v331_v33 = vpop.f32.mrf.mxu3 }
 0x777   :  { %v772_v35 = vpop.eup %771 }
 0x778   :  { %356 = vrot.lane.b32.xlu1 %v772_v35, %s995_s2 }
 0x779   :  { %v774_v37 = vpop.eup %773 }
 0x77a   :  { %v337_v38 = vadd.f32 1.0, %v774_v37 }
 0x77c   :  { %775 = vrcp.f32 %v337_v38  ;;  %v349_v44 = vand.u32 2147483648, %v337_v38  ;;  %vm343_vm14 = vweird.f32 %v337_v38  ;;  %v347_v45 = vand.u32 2147483647, %v337_v38 }
 0x77e   :  { %v350_v47 = vor.u32 1.1754944e-38, %v349_v44  ;;  %vm348_vm1 = vcmp.eq.f32.partialorder %v347_v45, 8.507059e+37 }
 0x782   :  { %v776_v39 = vpop.eup %775 }
 0x783   :  { %v339_v40 = vmul.f32 %v776_v39, %v337_v38  ;;  %vm344_vm13 = vweird.f32 %v776_v39 }
 0x784   :  { %vm345_vm15 = vmor %vm343_vm14, %vm344_vm13 }
 0x785   :  { %v340_v41 = vsub.f32 1.0, %v339_v40 }
 0x787   :  { %v341_v42 = vmul.f32 %v776_v39, %v340_v41 }
 0x789   :  { %v342_v43 = vadd.f32 %v776_v39, %v341_v42 }
 0x78b   :  { %v346_v46 = vsel %vm345_vm15, %v776_v39, %v342_v43 }
 0x78c   :  { %v351_v49 = vsel %vm348_vm1, %v350_v47, %v346_v46 }
 0x78d   :  { %v354_v51 = vmul.f32 %v351_v49, %v297_v24 }
 0x7ea   :  { %v357_v48 = vpop.permute.xlu1 %356 }
 0x7eb   :  { %v359_v50 = vmul.f32 %v357_v48, %v351_v49 }
 0x7ed   :  { %361 = vrot.lane.b32.xlu2 %v359_v50, %s995_s2 }
 0x847   :  { %v362_v52 = vpop.permute.xlu2 %361 }
 0x848   :  { %v364_v53 = vadd.f32 %v362_v52, %v354_v51 }
 0x84a   :  { %777 = vtanh.f32 %v364_v53 }
 0x850   :  { %v778_v54 = vpop.eup %777 }
 0x851   :  { %367 = vrot.lane.b32.xlu0 %v778_v54, %s995_s2 }
 0x8c3   :  { %v368_v55 = vpop.permute.xlu0 %367 }
 0x8c4   :  { %v1087_v56 = vmul.f32 %v368_v55, %v351_v49  ;;  %v512_v55 = vld [vmem:[#allocation4 + $0x18] sm:$0xff]  }
 0x8c6   :  { %v380_v57 = vpack.c.bf16 %v1087_v56, %v1087_v56 }
 0x8c8   :  { %382 = vrot.lane.b32.xlu1 %v380_v57, %s990_s29  ;;  %v513_v57 = vunpack.c.l.bf16 %v512_v55 }
 0x93a   :  { %v383_v58 = vpop.permute.xlu1 %382 }
 0x93b   :  { %724 = vmatmul.msk.bf16.vlgmr.msrb.gmra.mxu0 %vm87_vm0, %v383_v58 }
 0x9b8   :  { %v396_v61 = vpop.f32.mrf.mxu0 }
 0x9b9   :  { %v400_v63 = vadd.f32 %v396_v61, %v379_v60 }
 0x9bb   :  { %779 = vtanh.f32 %v400_v63  ;;  %v725_v2 = vmul.f32 -1.442695, %v400_v63 }
 0x9bd   :  { %781 = vpow2.f32 %v725_v2 }
 0x9c0   :  { %v398_v0 = vpop.f32.mrf.mxu0 }
 0x9c1   :  { %v780_v1 = vpop.eup %779 }
 0x9c2   :  { %423 = vrot.lane.b32.xlu2 %v780_v1, %s995_s2 }
 0x9c3   :  { %v782_v3 = vpop.eup %781 }
 0x9c4   :  { %v404_v4 = vadd.f32 1.0, %v782_v3 }
 0x9c6   :  { %783 = vrcp.f32 %v404_v4  ;;  %v416_v10 = vand.u32 2147483648, %v404_v4  ;;  %vm410_vm3 = vweird.f32 %v404_v4  ;;  %v414_v11 = vand.u32 2147483647, %v404_v4 }
 0x9c8   :  { %v417_v13 = vor.u32 1.1754944e-38, %v416_v10  ;;  %vm415_vm5 = vcmp.eq.f32.partialorder %v414_v11, 8.507059e+37 }
 0x9cc   :  { %v784_v5 = vpop.eup %783 }
 0x9cd   :  { %v406_v6 = vmul.f32 %v784_v5, %v404_v4  ;;  %vm411_vm2 = vweird.f32 %v784_v5 }
 0x9ce   :  { %vm412_vm4 = vmor %vm410_vm3, %vm411_vm2 }
 0x9cf   :  { %v407_v7 = vsub.f32 1.0, %v406_v6 }
 0x9d1   :  { %v408_v8 = vmul.f32 %v784_v5, %v407_v7 }
 0x9d3   :  { %v409_v9 = vadd.f32 %v784_v5, %v408_v8 }
 0x9d5   :  { %v413_v12 = vsel %vm412_vm4, %v784_v5, %v409_v9 }
 0x9d6   :  { %v418_v15 = vsel %vm415_vm5, %v417_v13, %v413_v12 }
 0x9d7   :  { %v421_v17 = vmul.f32 %v418_v15, %v364_v53 }
 0xa1c   :  { %v424_v14 = vpop.permute.xlu2 %423 }
 0xa1d   :  { %v426_v16 = vmul.f32 %v424_v14, %v418_v15 }
 0xa1f   :  { %428 = vrot.lane.b32.xlu0 %v426_v16, %s995_s2 }
 0xa91   :  { %v429_v18 = vpop.permute.xlu0 %428 }
 0xa92   :  { %v431_v19 = vadd.f32 %v429_v18, %v421_v17 }
 0xa94   :  { %785 = vtanh.f32 %v431_v19 }
 0xa9a   :  { %v786_v20 = vpop.eup %785 }
 0xa9b   :  { %434 = vrot.lane.b32.xlu1 %v786_v20, %s995_s2 }
 0xb0d   :  { %v435_v21 = vpop.permute.xlu1 %434 }
 0xb0e   :  { %v1096_v22 = vmul.f32 %v435_v21, %v418_v15 }
 0xb10   :  { %v447_v23 = vpack.c.bf16 %v1096_v22, %v1096_v22 }
 0xb12   :  { %449 = vrot.lane.b32.xlu2 %v447_v23, %s990_s29  ;;  %v580_v23 = vunpack.c.h.bf16 %v512_v55 }
 0xb6c   :  { %v450_v24 = vpop.permute.xlu2 %449 }
 0xb6d   :  { %726 = vmatmul.msk.bf16.vlgmr.msrb.gmra.mxu1 %vm87_vm0, %v450_v24 }
 0xbea   :  { %v463_v26 = vpop.f32.mrf.mxu1 }
 0xbeb   :  { %v467_v28 = vadd.f32 %v463_v26, %v446_v25 }
 0xbed   :  { %787 = vtanh.f32 %v467_v28  ;;  %v727_v31 = vmul.f32 -1.442695, %v467_v28 }
 0xbef   :  { %789 = vpow2.f32 %v727_v31 }
 0xbf2   :  { %v465_v29 = vpop.f32.mrf.mxu1 }
 0xbf3   :  { %v788_v30 = vpop.eup %787 }
 0xbf4   :  { %490 = vrot.lane.b32.xlu0 %v788_v30, %s995_s2 }
 0xbf5   :  { %v790_v32 = vpop.eup %789 }
 0xbf6   :  { %v471_v33 = vadd.f32 1.0, %v790_v32 }
 0xbf8   :  { %791 = vrcp.f32 %v471_v33  ;;  %v483_v40 = vand.u32 2147483648, %v471_v33  ;;  %vm477_vm7 = vweird.f32 %v471_v33  ;;  %v481_v41 = vand.u32 2147483647, %v471_v33 }
 0xbfa   :  { %v484_v43 = vor.u32 1.1754944e-38, %v483_v40  ;;  %vm482_vm9 = vcmp.eq.f32.partialorder %v481_v41, 8.507059e+37 }
 0xbfe   :  { %v792_v35 = vpop.eup %791 }
 0xbff   :  { %v473_v36 = vmul.f32 %v792_v35, %v471_v33  ;;  %vm478_vm6 = vweird.f32 %v792_v35 }
 0xc00   :  { %vm479_vm8 = vmor %vm477_vm7, %vm478_vm6 }
 0xc01   :  { %v474_v37 = vsub.f32 1.0, %v473_v36 }
 0xc03   :  { %v475_v38 = vmul.f32 %v792_v35, %v474_v37 }
 0xc05   :  { %v476_v39 = vadd.f32 %v792_v35, %v475_v38 }
 0xc07   :  { %v480_v42 = vsel %vm479_vm8, %v792_v35, %v476_v39 }
 0xc08   :  { %v485_v45 = vsel %vm482_vm9, %v484_v43, %v480_v42 }
 0xc09   :  { %v488_v47 = vmul.f32 %v485_v45, %v431_v19 }
 0xc66   :  { %v491_v44 = vpop.permute.xlu0 %490 }
 0xc67   :  { %v493_v46 = vmul.f32 %v491_v44, %v485_v45 }
 0xc69   :  { %495 = vrot.lane.b32.xlu1 %v493_v46, %s995_s2 }
 0xcdb   :  { %v496_v48 = vpop.permute.xlu1 %495 }
 0xcdc   :  { %v498_v49 = vadd.f32 %v496_v48, %v488_v47 }
 0xcde   :  { %793 = vtanh.f32 %v498_v49 }
 0xce4   :  { %v794_v50 = vpop.eup %793 }
 0xce5   :  { %501 = vrot.lane.b32.xlu2 %v794_v50, %s995_s2 }
 0xd3f   :  { %v502_v51 = vpop.permute.xlu2 %501 }
 0xd40   :  { %v1105_v52 = vmul.f32 %v502_v51, %v485_v45 }
 0xd42   :  { %v514_v53 = vpack.c.bf16 %v1105_v52, %v1105_v52 }
 0xd44   :  { %516 = vrot.lane.b32.xlu0 %v514_v53, %s990_s29 }
 0xdb6   :  { %v517_v54 = vpop.permute.xlu0 %516 }
 0xdb7   :  { %728 = vmatmul.msk.bf16.vlgmr.msrb.gmra.mxu2 %vm87_vm0, %v517_v54 }
 0xe3a   :  { %v530_v58 = vpop.f32.mrf.mxu2 }
 0xe3b   :  { %v534_v59 = vadd.f32 %v530_v58, %v513_v57 }
 0xe3d   :  { %795 = vtanh.f32 %v534_v59  ;;  %v729_v63 = vmul.f32 -1.442695, %v534_v59 }
 0xe3f   :  { %797 = vpow2.f32 %v729_v63 }
 0xe42   :  { %v532_v60 = vpop.f32.mrf.mxu2 }
 0xe43   :  { %v796_v61 = vpop.eup %795 }
 0xe44   :  { %557 = vrot.lane.b32.xlu1 %v796_v61, %s995_s2 }
 0xe45   :  { %v798_v0 = vpop.eup %797 }
 0xe46   :  { %v538_v1 = vadd.f32 1.0, %v798_v0 }
 0xe48   :  { %799 = vrcp.f32 %v538_v1  ;;  %v550_v7 = vand.u32 2147483648, %v538_v1  ;;  %vm544_vm11 = vweird.f32 %v538_v1  ;;  %v548_v8 = vand.u32 2147483647, %v538_v1 }
 0xe4a   :  { %v551_v10 = vor.u32 1.1754944e-38, %v550_v7  ;;  %vm549_vm13 = vcmp.eq.f32.partialorder %v548_v8, 8.507059e+37 }
 0xe4e   :  { %v800_v2 = vpop.eup %799 }
 0xe4f   :  { %v540_v3 = vmul.f32 %v800_v2, %v538_v1  ;;  %vm545_vm10 = vweird.f32 %v800_v2 }
 0xe50   :  { %vm546_vm12 = vmor %vm544_vm11, %vm545_vm10 }
 0xe51   :  { %v541_v4 = vsub.f32 1.0, %v540_v3 }
 0xe53   :  { %v542_v5 = vmul.f32 %v800_v2, %v541_v4 }
 0xe55   :  { %v543_v6 = vadd.f32 %v800_v2, %v542_v5 }
 0xe57   :  { %v547_v9 = vsel %vm546_vm12, %v800_v2, %v543_v6 }
 0xe58   :  { %v552_v12 = vsel %vm549_vm13, %v551_v10, %v547_v9 }
 0xe59   :  { %v555_v14 = vmul.f32 %v552_v12, %v498_v49 }
 0xeb6   :  { %v558_v11 = vpop.permute.xlu1 %557 }
 0xeb7   :  { %v560_v13 = vmul.f32 %v558_v11, %v552_v12 }
 0xeb9   :  { %562 = vrot.lane.b32.xlu2 %v560_v13, %s995_s2 }
 0xf13   :  { %v563_v15 = vpop.permute.xlu2 %562 }
 0xf14   :  { %v565_v16 = vadd.f32 %v563_v15, %v555_v14 }
 0xf16   :  { %801 = vtanh.f32 %v565_v16 }
 0xf1c   :  { %v802_v17 = vpop.eup %801 }
 0xf1d   :  { %568 = vrot.lane.b32.xlu0 %v802_v17, %s995_s2 }
 0xf8f   :  { %v569_v18 = vpop.permute.xlu0 %568 }
 0xf90   :  { %v571_v19 = vmul.f32 %v569_v18, %v552_v12 }
 0xf92   :  { %v581_v20 = vpack.c.bf16 %v571_v19, %v571_v19 }
 0xf94   :  { %583 = vrot.lane.b32.xlu1 %v581_v20, %s990_s29 }
0x1006   :  { %v584_v21 = vpop.permute.xlu1 %583 }
0x1007   :  { %730 = vmatmul.msk.bf16.vlgmr.msrb.gmra.mxu3 %vm87_vm0, %v584_v21 }
0x108a   :  { %v597_v24 = vpop.f32.mrf.mxu3 }
0x108b   :  { %v601_v25 = vadd.f32 %v597_v24, %v580_v23 }
0x108d   :  { %803 = vtanh.f32 %v601_v25  ;;  %v731_v29 = vmul.f32 -1.442695, %v601_v25 }
0x108f   :  { %805 = vpow2.f32 %v731_v29 }
0x1092   :  { %v599_v26 = vpop.f32.mrf.mxu3 }
0x1093   :  { %v804_v28 = vpop.eup %803 }
0x1094   :  { %624 = vrot.lane.b32.xlu2 %v804_v28, %s995_s2 }
0x1095   :  { %v806_v30 = vpop.eup %805 }
0x1096   :  { %v605_v31 = vadd.f32 1.0, %v806_v30 }
0x1098   :  { %807 = vrcp.f32 %v605_v31  ;;  %v617_v38 = vand.u32 2147483648, %v605_v31  ;;  %vm611_vm15 = vweird.f32 %v605_v31  ;;  %v615_v39 = vand.u32 2147483647, %v605_v31 }
0x109a   :  { %v618_v41 = vor.u32 1.1754944e-38, %v617_v38  ;;  %vm616_vm2 = vcmp.eq.f32.partialorder %v615_v39, 8.507059e+37 }
0x109c   :  { %305 = vrot.lane.b32.xlu2 %v1078_v27, %s990_s29 }
0x109e   :  { %v808_v32 = vpop.eup %807 }
0x109f   :  { %v607_v33 = vmul.f32 %v808_v32, %v605_v31  ;;  %vm612_vm14 = vweird.f32 %v808_v32 }
0x10a0   :  { %vm613_vm1 = vmor %vm611_vm15, %vm612_vm14 }
0x10a1   :  { %v608_v35 = vsub.f32 1.0, %v607_v33 }
0x10a3   :  { %v609_v36 = vmul.f32 %v808_v32, %v608_v35 }
0x10a5   :  { %v610_v37 = vadd.f32 %v808_v32, %v609_v36 }
0x10a7   :  { %v614_v40 = vsel %vm613_vm1, %v808_v32, %v610_v37 }
0x10a8   :  { %v619_v27 = vsel %vm616_vm2, %v618_v41, %v614_v40 }
0x10a9   :  { %v622_v45 = vmul.f32 %v619_v27, %v565_v16 }
0x10ee   :  { %v625_v42 = vpop.permute.xlu2 %624 }
0x10ef   :  { %v627_v43 = vmul.f32 %v625_v42, %v619_v27 }
0x10f1   :  { %629 = vrot.lane.b32.xlu0 %v627_v43, %s995_s2 }
0x10f6   :  { %v306_v44 = vpop.permute.xlu2 %305 }
0x10f7   :  { %309 = vst.msk [vmem:[#allocation12 + $0x10] sm:$0xff] %vm87_vm0, %v306_v44 }
0x10f9   :  { %172 = vrot.lane.b32.xlu0 %v1060_v34, %s990_s29 }
0x1101   :  { %372 = vrot.lane.b32.xlu0 %v1087_v56, %s990_s29 }
0x1109   :  { %573 = vrot.lane.b32.xlu0 %v571_v19, %s990_s29 }
0x1163   :  { %v630_v46 = vpop.permute.xlu0 %629 }
0x1164   :  { %v632_v47 = vadd.f32 %v630_v46, %v622_v45 }
0x1166   :  { %809 = vtanh.f32 %v632_v47 }
0x116b   :  { %v173_v48 = vpop.permute.xlu0 %172 }
0x116c   :  { %v810_v49 = vpop.eup %809  ;;  %175 = vst.msk [vmem:[#allocation12] sm:$0xff] %vm87_vm0, %v173_v48 }
0x116d   :  { %635 = vrot.lane.b32.xlu1 %v810_v49, %s995_s2 }
0x1173   :  { %v373_v50 = vpop.permute.xlu0 %372 }
0x1174   :  { %376 = vst.msk [vmem:[#allocation12 + $0x18] sm:$0xff] %vm87_vm0, %v373_v50 }
0x1175   :  { %238 = vrot.lane.b32.xlu1 %v1069_v62, %s990_s29 }
0x117b   :  { %v574_v34 = vpop.permute.xlu0 %573 }
0x117c   :  { %577 = vst.msk [vmem:[#allocation12 + $0x30] sm:$0xff] %vm87_vm0, %v574_v34 }
0x117d   :  { %439 = vrot.lane.b32.xlu1 %v1096_v22, %s990_s29 }
0x1185   :  { %647 = vrot.lane.b32.xlu1 %v632_v47, %s996_s3 }
0x11df   :  { %v636_v56 = vpop.permute.xlu1 %635 }
0x11e0   :  { %v638_v51 = vmul.f32 %v636_v56, %v619_v27 }
0x11e2   :  { %640 = vrot.lane.b32.xlu2 %v638_v51, %s990_s29 }
0x11e7   :  { %v239_v53 = vpop.permute.xlu1 %238 }
0x11e8   :  { %242 = vst.msk [vmem:[#allocation12 + $0x8] sm:$0xff] %vm87_vm0, %v239_v53 }
0x11ea   :  { %506 = vrot.lane.b32.xlu2 %v1105_v52, %s990_s29 }
0x11ef   :  { %v440_v54 = vpop.permute.xlu1 %439 }
0x11f0   :  { %443 = vst.msk [vmem:[#allocation12 + $0x20] sm:$0xff] %vm87_vm0, %v440_v54 }
0x11f7   :  { %v648_v62 = vpop.permute.xlu1 %647 }
0x11f8   :  { %650 = vst.msk [vmem:[#allocation3] sm:$0xff] %vm87_vm0, %v648_v62 }
0x11f9   :  { %655 = vst.msk [vmem:[#allocation15] sm:$0xff] %vm87_vm0, %v648_v62 }
0x123c   :  { %v641_v22 = vpop.permute.xlu2 %640 }
0x123d   :  { %644 = vst.msk [vmem:[#allocation12 + $0x38] sm:$0xff] %vm87_vm0, %v641_v22 }
0x123e   :  { %645 = vst.msk [vmem:[#allocation2] sm:$0xff] %vm87_vm0, %v641_v22 }
0x123f   :  { %654 = vst.msk [vmem:[#allocation13] sm:$0xff] %vm87_vm0, %v641_v22 }
0x1240   :  { %679 = dma.vmem_to_hbm [thread:$0]  %s675_s18, 128, %s677_s21, [#allocation14]  }
0x1241   :  { %690 = dma.vmem_to_hbm [thread:$0]  %s686_s23, 128, %s688_s26, [#allocation14]  }
0x1244   :  { %v507_v52 = vpop.permute.xlu2 %506 }
0x1245   :  { %510 = vst.msk [vmem:[#allocation12 + $0x28] sm:$0xff] %vm87_vm0, %v507_v52 }
0x1246   :  { %668 = dma.vmem_to_hbm [thread:$0]  %s661_s28, 1024, %s663_s30, [#allocation6], %s1000_s6, %s1000_s6, %s1001_s7  }
0x1247   :  { %985 = dma.done.wait [#allocation6], 1024  }
0x1248   :  { %986 = vsyncadd [#allocation6], 4294966272 }
0x1249   :  { %987 = dma.done.wait [#allocation14], 256  }
0x124a   :  { %988 = vsyncadd [#allocation14], 4294967040 }
0x124b   :  { %703 = vsyncpa [#allocation5], 1 }
0x124c   :  { %704 = vsyncpa [#allocation8], 1 }
0x124d   :  { %705 = vsyncpa [#allocation11], 1 }
0x124e   :  { %706 = vsyncpa [#allocation6], 1 }
0x124f   :  { %707 = vsyncpa [#allocation14], 1 }

</bundles_post_ra>
